<compile_context>
chip_gen: v7x
topology: tpu7x:2x2x1
jax: 0.10.0
libtpu: 0.0.40
codegen_flags: <defaults>
</compile_context>

<pallas_src>
import functools
import math

import jax
import jax.numpy as jnp
from jax.experimental import pallas as pl
from jax.experimental.pallas import tpu as pltpu

_LANE = 128
_SUBLANE_BF16 = 16


def _round_up(n, m):
    return ((n + m - 1) // m) * m


def _cdiv(a, b):
    return (a + b - 1) // b


def _mlp_kernel(x_ref, w1_ref, b1_ref, w2_ref, b2_ref, o_ref, *, hchunk):
    """Fused fc1 -> ReLU -> fc2 on one (tb, d_in_p) activation tile.

    The hidden dimension is processed in `hchunk`-wide slabs so the f32
    intermediate stays at a few hundred KiB instead of (tb, hidden) f32.
    """
    x = x_ref[...]
    h_total = w1_ref.shape[1]
    n_chunks = h_total // hchunk

    acc = jnp.zeros(o_ref.shape, jnp.float32)
    for c in range(n_chunks):                    # static trip count
        lo, hi = c * hchunk, (c + 1) * hchunk
        # fc1 slab on the MXU: bf16 operands, f32 accumulation.
        h = jnp.dot(x, w1_ref[:, lo:hi], preferred_element_type=jnp.float32)
        # Bias add + ReLU stay in f32 (fast VPU path on v5e/v6e/v7x).
        h = jnp.maximum(h + b1_ref[:, lo:hi], 0.0)
        # fc2 partial: cast the slab to bf16 for the MXU, accumulate in f32.
        acc = acc + jnp.dot(h.astype(w2_ref.dtype), w2_ref[lo:hi, :],
                            preferred_element_type=jnp.float32)
    o_ref[...] = (acc + b2_ref[...]).astype(o_ref.dtype)


def prepare_clip_nn_params(w1, b1, w2, b2, compute_dtype=jnp.bfloat16):
    """Pad/cast the weights ONCE (do NOT call per forward step).

    w1: (input_size, hidden)   b1: (1, hidden) or (hidden,)
    w2: (hidden, output_size)  b2: (1, output_size) or (output_size,)
    Returns lane-dense (128-padded) bf16 weights and f32 biases. Zero padding
    is exact: padded K rows/cols contribute 0 to the matmuls.
    """
    b1 = jnp.reshape(b1, (1, -1))
    b2 = jnp.reshape(b2, (1, -1))
    d_in, hidden = w1.shape
    d_out = w2.shape[1]
    d_in_p = _round_up(d_in, _LANE)
    h_p = _round_up(hidden, _LANE)
    d_out_p = _round_up(d_out, _LANE)

    w1p = jnp.zeros((d_in_p, h_p), compute_dtype).at[:d_in, :hidden].set(
        w1.astype(compute_dtype))
    b1p = jnp.zeros((1, h_p), jnp.float32).at[:, :hidden].set(
        b1.astype(jnp.float32))
    w2p = jnp.zeros((h_p, d_out_p), compute_dtype).at[:hidden, :d_out].set(
        w2.astype(compute_dtype))
    b2p = jnp.zeros((1, d_out_p), jnp.float32).at[:, :d_out].set(
        b2.astype(jnp.float32))
    return dict(w1=w1p, b1=b1p, w2=w2p, b2=b2p, d_in=d_in, d_out=d_out)


def _physical_vmem_bytes():
    try:
        return int(pltpu.get_tpu_info().vmem_capacity_bytes)
    except Exception:
        return 64 << 20  # conservative: v7x per-TensorCore VMEM


def clip_nn_forward(x, params, *, block_batch=256, out_dtype=None):
    """Forward pass of Clip_NN as a single fused Pallas kernel.

    x: (B, input_size); `params` from prepare_clip_nn_params (weights already
    padded + cast, so there is no per-call weight re-padding).
    Returns (B, output_size), dtype = x.dtype unless out_dtype is given
    (pass jnp.bfloat16 on v5e to halve the output HBM writeback).
    """
    w1p, b1p, w2p, b2p = params["w1"], params["b1"], params["w2"], params["b2"]
    d_in, d_out = params["d_in"], params["d_out"]
    d_in_p, h_p = w1p.shape
    d_out_p = w2p.shape[1]
    compute_dtype = w1p.dtype
    B = x.shape[0]
    out_dtype = x.dtype if out_dtype is None else out_dtype
    out_itemsize = jnp.dtype(out_dtype).itemsize

    # ---- batch tile: forced multiple of 16 sublanes (bf16 packing) ----
    tb = min(block_batch, _round_up(B, _SUBLANE_BF16))
    tb = max(_SUBLANE_BF16, _round_up(tb, _SUBLANE_BF16))
    # Prefer >= 2 grid steps so the "parallel" batch axis can shard across
    # both v7x TensorCores (harmless on 1-TC chips).
    if B > _SUBLANE_BF16 and _cdiv(B, tb) < 2:
        tb = _round_up(_cdiv(B, 2), _SUBLANE_BF16)
    grid = (_cdiv(B, tb),)

    # ---- hidden chunk (multiple of 128, <= 512) ----
    hchunk = math.gcd(h_p, 4 * _LANE)

    # ---- x: cast, and feature-pad ONLY if d_in is not lane aligned. ----
    # No batch padding: Pallas masks the partial last block; garbage rows only
    # feed output rows that are never written back.
    if d_in != d_in_p:
        xk = jnp.pad(x, ((0, 0), (0, d_in_p - d_in))).astype(compute_dtype)
    elif x.dtype != compute_dtype:
        xk = x.astype(compute_dtype)
    else:
        xk = x
    x_itemsize = jnp.dtype(xk.dtype).itemsize

    # ---- explicit VMEM budget: weights x1 buffer, streamed tiles x2 ----
    weight_bytes = int(w1p.nbytes + b1p.nbytes + w2p.nbytes + b2p.nbytes)
    stream_bytes = 2 * (tb * d_in_p * x_itemsize + tb * d_out_p * out_itemsize)
    interm_bytes = tb * hchunk * (4 + 2) + tb * d_out_p * 4
    needed = weight_bytes + stream_bytes + interm_bytes
    vmem_limit = int(needed * 1.3) + (2 << 20)
    vmem_limit = max(vmem_limit, 32 << 20)
    vmem_limit = min(vmem_limit, int(_physical_vmem_bytes() * 0.8))

    cost = pl.CostEstimate(
        flops=int(2 * grid[0] * tb * (d_in_p * h_p + h_p * d_out_p)),
        transcendentals=0,
        bytes_accessed=int(xk.size * x_itemsize + weight_bytes
                           + B * d_out_p * out_itemsize),
    )

    kernel = functools.partial(_mlp_kernel, hchunk=hchunk)

    # Weights / biases: constant index_map + single buffering -> one
    # VMEM-resident copy reused by every grid step (halves weight VMEM).
    resident = functools.partial(pl.BlockSpec, pipeline_mode=pl.Buffered(1))

    out_p = pl.pallas_call(
        kernel,
        out_shape=jax.ShapeDtypeStruct((B, d_out_p), out_dtype),
        grid=grid,
        in_specs=[
            # Activations: tiled along batch (double-buffered by the pipeline).
            pl.BlockSpec((tb, d_in_p), lambda i: (i, 0)),
            resident((d_in_p, h_p), lambda i: (0, 0)),
            resident((1, h_p), lambda i: (0, 0)),
            resident((h_p, d_out_p), lambda i: (0, 0)),
            resident((1, d_out_p), lambda i: (0, 0)),
        ],
        out_specs=pl.BlockSpec((tb, d_out_p), lambda i: (i, 0)),
        compiler_params=pltpu.CompilerParams(
            dimension_semantics=("parallel",),
            vmem_limit_bytes=vmem_limit),
        cost_estimate=cost,
    )(xk, w1p, b1p, w2p, b2p)

    # Strip the lane padding of the output features (if any) outside the kernel.
    return out_p if d_out == d_out_p else out_p[:, :d_out]


def init_clip_nn_params(key, input_size, hidden_size, output_size,
                        dtype=jnp.float32):
    """Deterministic init matching nn.Linear defaults:
    U(-1/sqrt(fan_in), 1/sqrt(fan_in)) for both weight and bias."""
    k1, k2, k3, k4 = jax.random.split(key, 4)
    bound1 = 1.0 / jnp.sqrt(jnp.float32(input_size))
    bound2 = 1.0 / jnp.sqrt(jnp.float32(hidden_size))
    w1 = jax.random.uniform(k1, (input_size, hidden_size), dtype,
                            minval=-bound1, maxval=bound1)
    b1 = jax.random.uniform(k2, (1, hidden_size), dtype,
                            minval=-bound1, maxval=bound1)
    w2 = jax.random.uniform(k3, (hidden_size, output_size), dtype,
                            minval=-bound2, maxval=bound2)
    b2 = jax.random.uniform(k4, (1, output_size), dtype,
                            minval=-bound2, maxval=bound2)
    return w1, b1, w2, b2


def _reference_forward_bf16(x, w1, b1, w2, b2):
    """Matches the kernel's numerics (bf16 MXU operands, f32 accumulation)."""
    h = jnp.dot(x.astype(jnp.bfloat16), w1.astype(jnp.bfloat16),
                preferred_element_type=jnp.float32) + b1.astype(jnp.float32)
    h = jnp.maximum(h, 0.0)
    out = jnp.dot(h.astype(jnp.bfloat16), w2.astype(jnp.bfloat16),
                  preferred_element_type=jnp.float32) + b2.astype(jnp.float32)
    return out.astype(x.dtype)


def _reference_forward_f32(x, w1, b1, w2, b2):
    h = jnp.maximum(x @ w1 + b1, 0.0)
    return h @ w2 + b2


if __name__ == "__main__":
    # Small shapes consistent with the module: (batch, input_size) input.
    batch, input_size, hidden_size, output_size = 8, 64, 32, 8

    key = jax.random.PRNGKey(0)
    kx, kp = jax.random.split(key)
    x = jax.random.normal(kx, (batch, input_size), dtype=jnp.float32)
    w1, b1, w2, b2 = init_clip_nn_params(kp, input_size, hidden_size,
                                         output_size)

    # Pad/cast the weights once (per review: not per forward call).
    params = prepare_clip_nn_params(w1, b1, w2, b2)

    out = clip_nn_forward(x, params)
    out = jax.block_until_ready(out)

    assert out.shape == (batch, output_size)
    # Tight check vs. a reference using the same bf16/f32-accum numerics.
    ref_bf16 = _reference_forward_bf16(x, w1, b1, w2, b2)
    assert jnp.allclose(out, ref_bf16, atol=1e-3, rtol=1e-3)
    # Loose semantic check vs. the pure-f32 PyTorch-equivalent math.
    ref_f32 = _reference_forward_f32(x, w1, b1, w2, b2)
    assert jnp.allclose(out, ref_f32, atol=5e-2, rtol=5e-2)

    print("KERNEL_OK")
</pallas_src>

<mosaic_0001>
module attributes {stable_mosaic.version = 11 : i64} {
  func.func @_mlp_kernel(%arg0: i32, %arg1: memref<16x128xbf16, #tpu.memory_space<vmem>>, %arg2: memref<128x128xbf16, #tpu.memory_space<vmem>>, %arg3: memref<1x128xf32, #tpu.memory_space<vmem>>, %arg4: memref<128x128xbf16, #tpu.memory_space<vmem>>, %arg5: memref<1x128xf32, #tpu.memory_space<vmem>>, %arg6: memref<16x128xf32, #tpu.memory_space<vmem>>) attributes {dimension_semantics = [#tpu.dimension_semantics<parallel>], iteration_bounds = array<i64: 1>, scalar_prefetch = 0 : i64, scratch_operands = 0 : i64, tpu.core_type = #tpu.core_type<tc>, window_params = [{transform_indices = @transform_0, window_bounds = array<i64: 16, 128>}, {pipeline_mode = #tpu.pipeline_mode<synchronous>, transform_indices = @transform_1, window_bounds = array<i64: 128, 128>}, {pipeline_mode = #tpu.pipeline_mode<synchronous>, transform_indices = @transform_2, window_bounds = array<i64: 1, 128>}, {pipeline_mode = #tpu.pipeline_mode<synchronous>, transform_indices = @transform_3, window_bounds = array<i64: 128, 128>}, {pipeline_mode = #tpu.pipeline_mode<synchronous>, transform_indices = @transform_4, window_bounds = array<i64: 1, 128>}, {transform_indices = @transform_5, window_bounds = array<i64: 16, 128>}]} {
    %c0 = arith.constant 0 : index
    %c0_0 = arith.constant 0 : index
    %0 = vector.load %arg1[%c0, %c0_0] : memref<16x128xbf16, #tpu.memory_space<vmem>>, vector<16x128xbf16>
    %cst = arith.constant 0.000000e+00 : f32
    %1 = vector.broadcast %cst : f32 to vector<16x128xf32>
    %c0_1 = arith.constant 0 : index
    %c0_2 = arith.constant 0 : index
    %2 = vector.load %arg2[%c0_1, %c0_2] : memref<128x128xbf16, #tpu.memory_space<vmem>>, vector<128x128xbf16>
    %cst_3 = arith.constant dense<0.000000e+00> : vector<16x128xf32>
    %3 = tpu.matmul %0, %2, %cst_3 {dimension_numbers = #tpu.dot_dimension_numbers<[1], [0], [0], [1], [0, 0, 1, 1], [], []>} : vector<16x128xbf16>, vector<128x128xbf16>, vector<16x128xf32> -> vector<16x128xf32>
    %c0_4 = arith.constant 0 : index
    %c0_5 = arith.constant 0 : index
    %4 = vector.load %arg3[%c0_4, %c0_5] : memref<1x128xf32, #tpu.memory_space<vmem>>, vector<1x128xf32>
    %5 = vector.broadcast %4 : vector<1x128xf32> to vector<16x128xf32>
    %6 = arith.addf %3, %5 : vector<16x128xf32>
    %cst_6 = arith.constant 0.000000e+00 : f32
    %7 = vector.broadcast %cst_6 : f32 to vector<16x128xf32>
    %8 = arith.maximumf %6, %7 : vector<16x128xf32>
    %9 = arith.truncf %8 : vector<16x128xf32> to vector<16x128xbf16>
    %c0_7 = arith.constant 0 : index
    %c0_8 = arith.constant 0 : index
    %10 = vector.load %arg4[%c0_7, %c0_8] : memref<128x128xbf16, #tpu.memory_space<vmem>>, vector<128x128xbf16>
    %cst_9 = arith.constant dense<0.000000e+00> : vector<16x128xf32>
    %11 = tpu.matmul %9, %10, %cst_9 {dimension_numbers = #tpu.dot_dimension_numbers<[1], [0], [0], [1], [0, 0, 1, 1], [], []>} : vector<16x128xbf16>, vector<128x128xbf16>, vector<16x128xf32> -> vector<16x128xf32>
    %12 = arith.addf %1, %11 : vector<16x128xf32>
    %c0_10 = arith.constant 0 : index
    %c0_11 = arith.constant 0 : index
    %13 = vector.load %arg5[%c0_10, %c0_11] : memref<1x128xf32, #tpu.memory_space<vmem>>, vector<1x128xf32>
    %14 = vector.broadcast %13 : vector<1x128xf32> to vector<16x128xf32>
    %15 = arith.addf %12, %14 : vector<16x128xf32>
    %c0_12 = arith.constant 0 : index
    %c0_13 = arith.constant 0 : index
    %16 = vector.load %arg6[%c0_12, %c0_13] : memref<16x128xf32, #tpu.memory_space<vmem>>, vector<16x128xf32>
    tpu.vector_store %arg6[%c0_12, %c0_13], %15 {strides = array<i32>} : memref<16x128xf32, #tpu.memory_space<vmem>>, vector<16x128xf32>,
    return
  }
  func.func @transform_0(%arg0: i32) -> (i32, i32) {
    %c0_i32 = arith.constant 0 : i32
    %c0_i32_0 = arith.constant 0 : i32
    return %arg0, %c0_i32 : i32, i32
  }
  func.func @transform_1(%arg0: i32) -> (i32, i32) {
    %c0_i32 = arith.constant 0 : i32
    %c0_i32_0 = arith.constant 0 : i32
    %c0_i32_1 = arith.constant 0 : i32
    return %c0_i32, %c0_i32_0 : i32, i32
  }
  func.func @transform_2(%arg0: i32) -> (i32, i32) {
    %c0_i32 = arith.constant 0 : i32
    %c0_i32_0 = arith.constant 0 : i32
    %c0_i32_1 = arith.constant 0 : i32
    return %c0_i32, %c0_i32_0 : i32, i32
  }
  func.func @transform_3(%arg0: i32) -> (i32, i32) {
    %c0_i32 = arith.constant 0 : i32
    %c0_i32_0 = arith.constant 0 : i32
    %c0_i32_1 = arith.constant 0 : i32
    return %c0_i32, %c0_i32_0 : i32, i32
  }
  func.func @transform_4(%arg0: i32) -> (i32, i32) {
    %c0_i32 = arith.constant 0 : i32
    %c0_i32_0 = arith.constant 0 : i32
    %c0_i32_1 = arith.constant 0 : i32
    return %c0_i32, %c0_i32_0 : i32, i32
  }
  func.func @transform_5(%arg0: i32) -> (i32, i32) {
    %c0_i32 = arith.constant 0 : i32
    %c0_i32_0 = arith.constant 0 : i32
    return %arg0, %c0_i32 : i32, i32
  }
}

</mosaic_0001>

<bundles_post_ra>
// kernel: tpu_custom_call.1
= control target key start
LH: loop header
LB: loop body
LE: loop exit
PB: predicated region body
PF: predicated region fallthrough
CT: control target
= control target key end

     0   :  { %10 = vsyncpa [#allocation3], 0  ;;  %s627_s0 = inlined_call_operand.hbm [shape: bf16[8,128], index: 0, kind: input, shape index: {}]   ;;  %s628_s1 = inlined_call_operand.hbm [shape: bf16[128,128], index: 1, kind: input, shape index: {}]   ;;  %s629_s2 = inlined_call_operand.vmem [shape: f32[1,128], index: 2, kind: input, shape index: {}]   ;;  %s630_s3 = inlined_call_operand.hbm [shape: bf16[128,128], index: 3, kind: input, shape index: {}]   ;;  %s631_s4 = inlined_call_operand.vmem [shape: f32[1,128], index: 4, kind: input, shape index: {}]   ;;  %s632_s5 = inlined_call_operand.hbm [shape: f32[8,128], index: 5, kind: output, shape index: {}]  }
   0x1   :  { %11 = vsyncpa [#allocation6], 0 }
   0x2   :  { %12 = vsyncpa [#allocation4], 0 }
   0x3   :  { %17 = vsyncadd [#allocation3], 64  ;;  %s516_s18 = smov [#allocation5]   ;;  %s517_s20 = smov [#allocation2]  }
   0x4   :  { %s30_s19 = sshll.u32 %s516_s18, 4  ;;  %s18_s21 = sshll.u32 %s517_s20, 4  ;;  %s31_s19 = int_to_ptr.vmem [resolvable:$true] %s30_s19  ;;  %s556_s21 = int_to_ptr.vmem [resolvable:$true] %s18_s21 }
   0x5   :  { %s422_s24 = scalar_lea.hbm %s628_s1, 1024 }
   0x6   :  { %p423_p0 = scmp.ne.s32.totalorder %s628_s1, %s422_s24  ;;  %p426_p1 = scmp.lt.u32.totalorder %s422_s24, %s628_s1 }
   0x8   :  { %p428_p2 = pnand %p426_p1, %p423_p0 }
   0xa   :  { %431 = shalt.err (!%p428_p2)
}
   0xb   :  { %s432_s29 = scalar_lea.vmem %s31_s19, 1024  ;;  %p437_p4 = scmp.lt.s32.totalorder %s31_s19, %s31_s19 }
   0xc   :  { %p433_p3 = scmp.ne.s32.totalorder %s31_s19, %s432_s29  ;;  %p438_p5 = scmp.lt.s32.totalorder %s432_s29, %s432_s29 }
   0xe   :  { %p439_p6 = por %p438_p5, %p437_p4 }
  0x10   :  { %p440_p7 = pnand %p439_p6, %p433_p3 }
  0x12   :  { %443 = shalt.err (!%p440_p7)
}
  0x13   :  { %s518_s30 = smov 64   ;;  %s519_s6 = smov 4  }
  0x14   :  { %36 = dma.hbm_to_vmem [thread:$0]  %s628_s1, 1024, %s31_s19, [#allocation6], %s518_s30, %s518_s30, %s519_s6  }
  0x15   :  { %s444_s11 = scalar_lea.hbm %s627_s0, 64 }
  0x16   :  { %p445_p8 = scmp.ne.s32.totalorder %s627_s0, %s444_s11  ;;  %p448_p9 = scmp.lt.u32.totalorder %s444_s11, %s627_s0 }
  0x18   :  { %p450_p10 = pnand %p448_p9, %p445_p8 }
  0x1a   :  { %453 = shalt.err (!%p450_p10)
}
  0x1b   :  { %s454_s16 = scalar_lea.vmem %s556_s21, 64  ;;  %s458_s1 = scalar_lea.vmem %s556_s21, 128 }
  0x1c   :  { %p455_p11 = scmp.ne.s32.totalorder %s556_s21, %s454_s16  ;;  %p459_p12 = scmp.lt.s32.totalorder %s556_s21, %s556_s21 }
  0x1d   :  { %p460_p13 = scmp.lt.s32.totalorder %s458_s1, %s454_s16 }
  0x1f   :  { %p461_p0 = por %p460_p13, %p459_p12 }
  0x21   :  { %p462_p1 = pnand %p461_p0, %p455_p11 }
  0x23   :  { %465 = shalt.err (!%p462_p1)
}
  0x24   :  { %24 = dma.hbm_to_vmem [thread:$0]  %s627_s0, 64, %s556_s21, [#allocation3], %s518_s30, %s518_s30, %s519_s6  }
  0x25   :  { %s520_s19 = smov [#allocation7]   ;;  %s466_s24 = scalar_lea.hbm %s630_s3, 1024 }
  0x26   :  { %s44_s20 = sshll.u32 %s520_s19, 4  ;;  %p467_p2 = scmp.ne.s32.totalorder %s630_s3, %s466_s24  ;;  %s45_s20 = int_to_ptr.vmem [resolvable:$true] %s44_s20 }
  0x27   :  { %p470_p3 = scmp.lt.u32.totalorder %s466_s24, %s630_s3 }
  0x29   :  { %p472_p4 = pnand %p470_p3, %p467_p2 }
  0x2b   :  { %475 = shalt.err (!%p472_p4)
}
  0x2c   :  { %s476_s29 = scalar_lea.vmem %s45_s20, 1024  ;;  %p481_p6 = scmp.lt.s32.totalorder %s45_s20, %s45_s20 }
  0x2d   :  { %p477_p5 = scmp.ne.s32.totalorder %s45_s20, %s476_s29  ;;  %p482_p7 = scmp.lt.s32.totalorder %s476_s29, %s476_s29 }
  0x2f   :  { %p483_p8 = por %p482_p7, %p481_p6 }
  0x31   :  { %p484_p9 = pnand %p483_p8, %p477_p5 }
  0x33   :  { %487 = shalt.err (!%p484_p9)
}
  0x34   :  { %50 = dma.hbm_to_vmem [thread:$0]  %s630_s3, 1024, %s45_s20, [#allocation6], %s518_s30, %s518_s30, %s519_s6  }
  0x35   :  { %510 = dma.done.wait [#allocation3], 128  }
  0x36   :  { %511 = vsyncadd [#allocation3], 4294967168 }
  0x37   :  { %512 = dma.done.wait [#allocation6], 2048  }
  0x38   :  { %513 = vsyncadd [#allocation6], 4294965248  ;;  %v521_v0 = vmov 0.0   ;;  %vm522_vm0 = vmmov 0   ;;  %v405_v1 = vld [vmem:[#allocation5] sm:$0xff]   ;;  %v406_v2 = vld [vmem:[#allocation5 + $0x8] sm:$0xff]  }
  0x39   :  { %355 = vmatprep.subr.bf16.mxu0 %v521_v0  ;;  %371 = vmatprep.mubr.msk.bf16.mxu0 %vm522_vm0, %v521_v0  ;;  %v407_v3 = vld [vmem:[#allocation5 + $0x10] sm:$0xff]   ;;  %v414_v4 = vld [vmem:[#allocation7] sm:$0xff]   ;;  %v408_v5 = vld [vmem:[#allocation5 + $0x18] sm:$0xff]  }
  0x3a   :  { %375 = vmatprep.subr.bf16.mxu1 %v521_v0  ;;  %391 = vmatprep.mubr.msk.bf16.mxu1 %vm522_vm0, %v521_v0  ;;  %v415_v6 = vld [vmem:[#allocation7 + $0x8] sm:$0xff]   ;;  %v409_v7 = vld [vmem:[#allocation5 + $0x20] sm:$0xff]   ;;  %v416_v8 = vld [vmem:[#allocation7 + $0x10] sm:$0xff]  }
  0x3b   :  { %356 = vmatpush3.bf16.msra.mxu0 %v405_v1  ;;  %376 = vmatpush3.bf16.msra.mxu1 %v414_v4  ;;  %v410_v9 = vld [vmem:[#allocation5 + $0x28] sm:$0xff]   ;;  %v417_v10 = vld [vmem:[#allocation7 + $0x18] sm:$0xff]   ;;  %v411_v11 = vld [vmem:[#allocation5 + $0x30] sm:$0xff]  }
  0x3c   :  { %357 = vmatprep.subr.bf16.mxu0 %v521_v0  ;;  %377 = vmatprep.subr.bf16.mxu1 %v521_v0  ;;  %v418_v12 = vld [vmem:[#allocation7 + $0x20] sm:$0xff]   ;;  %v412_v13 = vld [vmem:[#allocation5 + $0x38] sm:$0xff]   ;;  %v419_v14 = vld [vmem:[#allocation7 + $0x28] sm:$0xff]  }
  0x3d   :  { %v413_v15 = vld [vmem:[#allocation2] sm:$0xff]   ;;  %v420_v16 = vld [vmem:[#allocation7 + $0x30] sm:$0xff]  }
  0x3e   :  { %v421_v17 = vld [vmem:[#allocation7 + $0x38] sm:$0xff]  }
  0x3f   :  { %358 = vmatpush3.bf16.msra.mxu0 %v406_v2  ;;  %378 = vmatpush3.bf16.msra.mxu1 %v415_v6  ;;  %v318_v18 = vld [vmem:[%s629_s2] ss:$0 sm:$0xff] }
  0x40   :  { %359 = vmatprep.subr.bf16.mxu0 %v521_v0  ;;  %379 = vmatprep.subr.bf16.mxu1 %v521_v0  ;;  %v328_v28 = vld [vmem:[%s631_s4] ss:$0 sm:$0xff] }
  0x43   :  { %360 = vmatpush3.bf16.msra.mxu0 %v407_v3  ;;  %380 = vmatpush3.bf16.msra.mxu1 %v416_v8 }
  0x44   :  { %361 = vmatprep.subr.bf16.mxu0 %v521_v0  ;;  %381 = vmatprep.subr.bf16.mxu1 %v521_v0 }
  0x47   :  { %362 = vmatpush3.bf16.msra.mxu0 %v408_v5  ;;  %382 = vmatpush3.bf16.msra.mxu1 %v417_v10 }
  0x48   :  { %363 = vmatprep.subr.bf16.mxu0 %v521_v0  ;;  %383 = vmatprep.subr.bf16.mxu1 %v521_v0 }
  0x4b   :  { %364 = vmatpush3.bf16.msra.mxu0 %v409_v7  ;;  %384 = vmatpush3.bf16.msra.mxu1 %v418_v12 }
  0x4c   :  { %365 = vmatprep.subr.bf16.mxu0 %v521_v0  ;;  %385 = vmatprep.subr.bf16.mxu1 %v521_v0 }
  0x4f   :  { %366 = vmatpush3.bf16.msra.mxu0 %v410_v9  ;;  %386 = vmatpush3.bf16.msra.mxu1 %v419_v14 }
  0x50   :  { %367 = vmatprep.subr.bf16.mxu0 %v521_v0  ;;  %387 = vmatprep.subr.bf16.mxu1 %v521_v0 }
  0x53   :  { %368 = vmatpush3.bf16.msra.mxu0 %v411_v11  ;;  %388 = vmatpush3.bf16.msra.mxu1 %v420_v16 }
  0x54   :  { %369 = vmatprep.subr.bf16.mxu0 %v521_v0  ;;  %389 = vmatprep.subr.bf16.mxu1 %v521_v0 }
  0x57   :  { %370 = vmatpush3.bf16.msra.mxu0 %v412_v13  ;;  %390 = vmatpush3.bf16.msra.mxu1 %v421_v17 }
  0x5a   :  { %372 = vmatmul.mubr.bf16.vlgmr.msra.gmra.mrb[0].mxu0 %v413_v15 }
 0x12d   :  { %v176_v19 = vpop.f32.mrb[0].mxu0 }
 0x12e   :  { %v177_v20 = vadd.f32 %v318_v18, %v176_v19  ;;  %v373_v21 = vpop.f32.mrb[1].mxu0 }
 0x12f   :  { %v179_v22 = vpop.f32.mrb[2].mxu0 }
 0x130   :  { %v180_v23 = vadd.f32 %v318_v18, %v179_v22  ;;  %v374_v24 = vpop.f32.mrb[3].mxu0  ;;  %v183_v25 = vmax.f32 %v177_v20, 0.0 }
 0x132   :  { %v184_v26 = vmax.f32 %v180_v23, 0.0 }
 0x134   :  { %v185_v27 = vpack.c.bf16 %v184_v26, %v183_v25 }
 0x136   :  { %392 = vmatmul.mubr.bf16.vlgmr.msra.gmra.mrb[0].mxu1 %v185_v27 }
 0x209   :  { %v291_v29 = vpop.f32.mrb[0].mxu1 }
 0x20a   :  { %v292_v30 = vadd.f32 %v328_v28, %v291_v29  ;;  %v393_v31 = vpop.f32.mrb[1].mxu1 }
 0x20b   :  { %v294_v32 = vpop.f32.mrb[2].mxu1 }
 0x20c   :  { %298 = vst [vmem:[#allocation8] sm:$0xff] %v292_v30  ;;  %v295_v33 = vadd.f32 %v328_v28, %v294_v32  ;;  %v394_v34 = vpop.f32.mrb[3].mxu1 }
 0x20e   :  { %299 = vst [vmem:[#allocation8 + $0x8] sm:$0xff] %v295_v33 }
 0x20f   :  { %304 = vsyncadd [#allocation4], 128  ;;  %s523_s2 = smov [#allocation8]  }
 0x210   :  { %s305_s8 = sshll.u32 %s523_s2, 4  ;;  %s306_s8 = int_to_ptr.vmem [resolvable:$true] %s305_s8 }
 0x211   :  { %s488_s9 = scalar_lea.vmem %s306_s8, 128  ;;  %s492_s10 = scalar_lea.vmem %s306_s8, 256 }
 0x212   :  { %p489_p10 = scmp.ne.s32.totalorder %s306_s8, %s488_s9  ;;  %p493_p11 = scmp.lt.s32.totalorder %s306_s8, %s306_s8 }
 0x213   :  { %p494_p12 = scmp.lt.s32.totalorder %s492_s10, %s488_s9 }
 0x215   :  { %p495_p13 = por %p494_p12, %p493_p11 }
 0x217   :  { %p496_p0 = pnand %p495_p13, %p489_p10 }
 0x219   :  { %499 = shalt.err (!%p496_p0)
}
 0x21a   :  { %s500_s12 = scalar_lea.hbm %s632_s5, 128 }
 0x21b   :  { %p501_p1 = scmp.ne.s32.totalorder %s632_s5, %s500_s12  ;;  %p504_p2 = scmp.lt.u32.totalorder %s500_s12, %s632_s5 }
 0x21d   :  { %p506_p3 = pnand %p504_p2, %p501_p1 }
 0x21f   :  { %509 = shalt.err (!%p506_p3)
}
 0x220   :  { %s524_s1 = smov 128   ;;  %s525_s17 = smov 8  }
 0x221   :  { %311 = dma.vmem_to_hbm [thread:$0]  %s306_s8, 128, %s632_s5, [#allocation4], %s524_s1, %s524_s1, %s525_s17  }
 0x222   :  { %514 = dma.done.wait [#allocation4], 256  }
 0x223   :  { %515 = vsyncadd [#allocation4], 4294967040 }
 0x224   :  { %315 = vsyncpa [#allocation3], 1 }
 0x225   :  { %316 = vsyncpa [#allocation6], 1 }
 0x226   :  { %317 = vsyncpa [#allocation4], 1 }

</bundles_post_ra>
